<compile_context>
chip_gen: v7x
topology: tpu7x:2x2x1
jax: 0.10.0
libtpu: 0.0.40
codegen_flags: <defaults>
</compile_context>

<pallas_src>
import jax
import jax.numpy as jnp
from jax.experimental import pallas as pl
from jax.experimental.pallas import tpu as pltpu


def _round_up(x, m):
    return ((x + m - 1) // m) * m


def _energetic_classifier_kernel(x_ref, w1_ref, b1_ref, w2_ref, b2_ref, o_ref):
    # x:  (TB, nr_inputs)                    f32 or bf16 streamed tile
    # w1: (nr_inputs, HP) f32/bf16 ; b1: (1, HP) f32   (HP = hidden padded to 128)
    # w2: (HP, OP) f32            ; b2: (1, OP) f32    (OP = outputs padded to 128,
    #                                                    padded b2 lanes hold -1e30)
    # o:  (TB, OP) f32 lane-dense log-softmax tile
    x = x_ref[...].astype(w1_ref.dtype)           # in-kernel cast (no extra HBM pass)
    h = jnp.dot(x, w1_ref[...], preferred_element_type=jnp.float32)
    h = jnp.maximum(h + b1_ref[...], 0.0)         # ReLU; padded hidden lanes stay 0
    y = jnp.dot(h, w2_ref[...], preferred_element_type=jnp.float32) + b2_ref[...]
    # Numerically stable LogSoftmax over the lane axis; padded logits (-1e30)
    # never win the max and exp() underflows them to exactly 0 in the sum.
    m = jnp.max(y, axis=-1, keepdims=True)
    z = y - m
    lse = jnp.log(jnp.sum(jnp.exp(z), axis=-1, keepdims=True))
    o_ref[...] = (z - lse).astype(o_ref.dtype)


def _default_tile_batch(x_itemsize):
    # The kernel is HBM-bound on the x stream on every generation: 2048 f32
    # rows (~6.3 MiB/tile) or 4096 bf16 rows keeps the ~0.35us per-step
    # pipeline overhead at a few percent while fitting v7x's 64 MiB/TC VMEM.
    return 4096 if x_itemsize <= 2 else 2048


def _vmem_limit_bytes(tb, nr_inputs, hp, out_pad, x_itemsize, w1_itemsize):
    """Scoped-VMEM request derived from actual buffer sizes (not a flat 64 MiB)."""
    x_buf = 2 * tb * nr_inputs * x_itemsize                  # double-buffered x stream
    out_buf = 2 * tb * out_pad * 4                           # double-buffered output
    weights = 2 * (nr_inputs * hp * w1_itemsize + hp * 4     # resident W1/b1/W2/b2
                   + hp * out_pad * 4 + out_pad * 4)         # (double-buffered)
    epilogue = 4 * tb * out_pad * 4 + 2 * tb * hp * 4        # y/z/exp temps + hidden slab
    need = x_buf + out_buf + weights + epilogue + (8 << 20)  # compiler-scratch margin
    try:
        cap = pltpu.get_tpu_info().vmem_capacity_bytes
        if cap:
            need = min(need, cap - (8 << 20))                # leave headroom on v7x
    except Exception:
        need = min(need, 112 << 20)
    if need < (16 << 20):
        return None      # fits every generation's default scoped limit; don't override
    return int(need)


def prepare_params(w1, b1, w2, b2, *, use_bf16=False):
    """One-time parameter preparation (transpose + lane padding, hoisted out
    of the per-call path).

    w1: (nr_hidden, nr_inputs)  PyTorch Linear layout; b1: (nr_hidden,)
    w2: (nr_outputs, nr_hidden);                       b2: (nr_outputs,)
    """
    nr_hidden, nr_inputs = w1.shape
    nr_outputs = w2.shape[0]
    hp = _round_up(nr_hidden, 128)     # lane-dense hidden (MXU-friendly N / K)
    out_pad = _round_up(nr_outputs, 128)  # lane-dense output store
    w_dtype = jnp.bfloat16 if use_bf16 else jnp.float32

    w1_t = jnp.asarray(w1, jnp.float32).T                             # (nr_inputs, H)
    w1_p = jnp.pad(w1_t, ((0, 0), (0, hp - nr_hidden))).astype(w_dtype)
    b1_p = jnp.pad(jnp.asarray(b1, jnp.float32)[None, :],
                   ((0, 0), (0, hp - nr_hidden)))                     # padded -> ReLU(0)=0
    w2_t = jnp.asarray(w2, jnp.float32).T                             # (H, nr_outputs)
    w2_p = jnp.pad(w2_t, ((0, hp - nr_hidden), (0, out_pad - nr_outputs)))
    b2_p = jnp.pad(jnp.asarray(b2, jnp.float32)[None, :],
                   ((0, 0), (0, out_pad - nr_outputs)),
                   constant_values=-1e30)                             # mask padded logits
    return {
        "w1": w1_p, "b1": b1_p, "w2": w2_p, "b2": b2_p,
        "nr_inputs": nr_inputs, "nr_hidden": nr_hidden, "nr_outputs": nr_outputs,
        "hidden_pad": hp, "out_pad": out_pad,
    }


def energetic_classifier_forward(pn, params, *, tile_batch=None, return_padded=False):
    """pn: (B, nr_inputs) f32 or bf16. Returns (B, nr_outputs) log-softmax outputs
    (or the lane-padded (B, out_pad) slab if return_padded=True)."""
    nr_inputs = params["nr_inputs"]
    nr_outputs = params["nr_outputs"]
    hp = params["hidden_pad"]
    out_pad = params["out_pad"]
    w1, b1, w2, b2 = params["w1"], params["b1"], params["w2"], params["b2"]

    B = pn.shape[0]
    assert pn.shape[1] == nr_inputs
    x = pn
    if B < 8:
        x = jnp.pad(x, ((0, 8 - B), (0, 0)))   # only micro-batches get padded
    bp = x.shape[0]

    x_itemsize = jnp.dtype(x.dtype).itemsize
    if tile_batch is None:
        tile_batch = _default_tile_batch(x_itemsize)

    # Balanced tiles; force >=2 (>=4 for large batches) grid steps so the
    # "parallel" grid axis can actually shard work across v7x's two TensorCores.
    ntiles = pl.cdiv(bp, tile_batch)
    if bp >= 4096:
        ntiles = max(ntiles, 4)
    elif bp >= 1024:
        ntiles = max(ntiles, 2)
    tb = _round_up(pl.cdiv(bp, ntiles), 8)
    tb = min(tb, (bp // 8) * 8)        # never request a block taller than the array
    grid = (pl.cdiv(bp, tb),)          # ragged last tile handled by Pallas (no jnp.pad copy)

    flops = 2 * bp * (nr_inputs * hp + hp * out_pad)
    bytes_accessed = (
        bp * nr_inputs * x_itemsize                     # streamed x
        + w1.size * w1.dtype.itemsize                   # resident weights (read once)
        + (b1.size + w2.size + b2.size) * 4
        + bp * out_pad * 4                              # lane-dense output writeback
    )

    out = pl.pallas_call(
        _energetic_classifier_kernel,
        out_shape=jax.ShapeDtypeStruct((bp, out_pad), jnp.float32),
        grid_spec=pltpu.PrefetchScalarGridSpec(
            num_scalar_prefetch=0,
            grid=grid,
            in_specs=[
                pl.BlockSpec((tb, nr_inputs), lambda i: (i, 0)),   # streamed x tile
                # Weights/biases: constant index_map -> fetched once, VMEM-resident.
                # (Single-buffering them would reclaim only ~0.5 MiB, so it is
                #  not worth the extra pipeline-mode plumbing even on v7x.)
                pl.BlockSpec((nr_inputs, hp), lambda i: (0, 0)),   # W1 (padded H)
                pl.BlockSpec((1, hp), lambda i: (0, 0)),           # b1
                pl.BlockSpec((hp, out_pad), lambda i: (0, 0)),     # W2 (padded H x OP)
                pl.BlockSpec((1, out_pad), lambda i: (0, 0)),      # b2 (padded, -1e30)
            ],
            out_specs=pl.BlockSpec((tb, out_pad), lambda i: (i, 0)),  # lane-dense store
        ),
        compiler_params=pltpu.CompilerParams(
            dimension_semantics=("parallel",),          # megacore / v7x TC split
            vmem_limit_bytes=_vmem_limit_bytes(tb, nr_inputs, hp, out_pad,
                                               x_itemsize, w1.dtype.itemsize),
        ),
        cost_estimate=pl.CostEstimate(
            flops=int(flops),
            transcendentals=int(bp * (out_pad + 1)),    # exp per lane + log per row
            bytes_accessed=int(bytes_accessed),
        ),
    )(x, w1, b1, w2, b2)

    if return_padded:
        return out[:B] if bp != B else out
    # NOTE: this slice is an extra HBM pass over the output; pass
    # return_padded=True (and slice lazily / fuse the downstream NLL gather)
    # when output bandwidth matters.
    return out[:B, :nr_outputs]


def _ref_forward(pn, w1, b1, w2, b2):
    h = jnp.maximum(pn @ w1.T + b1, 0.0)
    y = h @ w2.T + b2
    return jax.nn.log_softmax(y, axis=-1)


if __name__ == "__main__":
    # Small shapes consistent with the module (nr_inputs=784, nr_outputs=10).
    nr_inputs_ = 784
    nr_hidden_ = 32
    nr_outputs_ = 10
    batch = 8

    key = jax.random.PRNGKey(0)
    k_x, k_w1, k_b1, k_w2, k_b2 = jax.random.split(key, 5)

    pn = jax.random.normal(k_x, (batch, nr_inputs_), dtype=jnp.float32)

    # Deterministic parameter init (PyTorch Linear layout: weight (out, in)).
    bound1 = 1.0 / jnp.sqrt(nr_inputs_)
    w1 = jax.random.uniform(k_w1, (nr_hidden_, nr_inputs_), jnp.float32, -bound1, bound1)
    b1 = jax.random.uniform(k_b1, (nr_hidden_,), jnp.float32, -bound1, bound1)
    bound2 = 1.0 / jnp.sqrt(nr_hidden_)
    w2 = jax.random.uniform(k_w2, (nr_outputs_, nr_hidden_), jnp.float32, -bound2, bound2)
    b2 = jax.random.uniform(k_b2, (nr_outputs_,), jnp.float32, -bound2, bound2)

    ref = _ref_forward(pn, w1, b1, w2, b2)

    # Exact f32 path.
    params_f32 = prepare_params(w1, b1, w2, b2, use_bf16=False)
    out = jax.block_until_ready(energetic_classifier_forward(pn, params_f32))
    assert out.shape == (batch, nr_outputs_)
    assert jnp.allclose(out, ref, atol=1e-5, rtol=1e-5)

    # Ragged batch (not a multiple of the tile): exercises the partial last tile
    # path that replaced the full-array jnp.pad copy.
    pn13 = jax.random.normal(k_x, (13, nr_inputs_), dtype=jnp.float32)
    ref13 = _ref_forward(pn13, w1, b1, w2, b2)
    out13 = jax.block_until_ready(energetic_classifier_forward(pn13, params_f32))
    assert out13.shape == (13, nr_outputs_)
    assert jnp.allclose(out13, ref13, atol=1e-5, rtol=1e-5)

    # bf16 weights + an already-bf16 input stream (halves the dominant HBM
    # traffic); accumulation and epilogue stay f32, so check loosely.
    params_bf16 = prepare_params(w1, b1, w2, b2, use_bf16=True)
    out_bf16 = jax.block_until_ready(
        energetic_classifier_forward(pn.astype(jnp.bfloat16), params_bf16))
    assert out_bf16.shape == (batch, nr_outputs_)
    assert jnp.allclose(out_bf16, ref, atol=1e-1, rtol=1e-1)

    print("KERNEL_OK")
</pallas_src>

<mosaic_0001>
module attributes {stable_mosaic.version = 11 : i64} {
  func.func @_energetic_classifier_kernel(%arg0: i32, %arg1: memref<8x784xf32, #tpu.memory_space<vmem>>, %arg2: memref<784x128xf32, #tpu.memory_space<vmem>>, %arg3: memref<1x128xf32, #tpu.memory_space<vmem>>, %arg4: memref<128x128xf32, #tpu.memory_space<vmem>>, %arg5: memref<1x128xf32, #tpu.memory_space<vmem>>, %arg6: memref<8x128xf32, #tpu.memory_space<vmem>>) attributes {dimension_semantics = [#tpu.dimension_semantics<parallel>], iteration_bounds = array<i64: 1>, scalar_prefetch = 0 : i64, scratch_operands = 0 : i64, tpu.core_type = #tpu.core_type<tc>, window_params = [{transform_indices = @transform_0, window_bounds = array<i64: 8, 784>}, {pipeline_mode = #tpu.pipeline_mode<synchronous>, transform_indices = @transform_1, window_bounds = array<i64: 784, 128>}, {pipeline_mode = #tpu.pipeline_mode<synchronous>, transform_indices = @transform_2, window_bounds = array<i64: 1, 128>}, {pipeline_mode = #tpu.pipeline_mode<synchronous>, transform_indices = @transform_3, window_bounds = array<i64: 128, 128>}, {pipeline_mode = #tpu.pipeline_mode<synchronous>, transform_indices = @transform_4, window_bounds = array<i64: 1, 128>}, {transform_indices = @transform_5, window_bounds = array<i64: 8, 128>}]} {
    %c0 = arith.constant 0 : index
    %c0_0 = arith.constant 0 : index
    %0 = vector.load %arg1[%c0, %c0_0] : memref<8x784xf32, #tpu.memory_space<vmem>>, vector<8x784xf32>
    %c0_1 = arith.constant 0 : index
    %c0_2 = arith.constant 0 : index
    %1 = vector.load %arg2[%c0_1, %c0_2] : memref<784x128xf32, #tpu.memory_space<vmem>>, vector<784x128xf32>
    %cst = arith.constant dense<0.000000e+00> : vector<8x128xf32>
    %2 = tpu.matmul %0, %1, %cst {dimension_numbers = #tpu.dot_dimension_numbers<[1], [0], [0], [1], [0, 0, 1, 1], [], []>} : vector<8x784xf32>, vector<784x128xf32>, vector<8x128xf32> -> vector<8x128xf32>
    %c0_3 = arith.constant 0 : index
    %c0_4 = arith.constant 0 : index
    %3 = vector.load %arg3[%c0_3, %c0_4] : memref<1x128xf32, #tpu.memory_space<vmem>>, vector<1x128xf32>
    %4 = vector.broadcast %3 : vector<1x128xf32> to vector<8x128xf32>
    %5 = arith.addf %2, %4 : vector<8x128xf32>
    %cst_5 = arith.constant 0.000000e+00 : f32
    %6 = vector.broadcast %cst_5 : f32 to vector<8x128xf32>
    %7 = arith.maximumf %5, %6 : vector<8x128xf32>
    %c0_6 = arith.constant 0 : index
    %c0_7 = arith.constant 0 : index
    %8 = vector.load %arg4[%c0_6, %c0_7] : memref<128x128xf32, #tpu.memory_space<vmem>>, vector<128x128xf32>
    %cst_8 = arith.constant dense<0.000000e+00> : vector<8x128xf32>
    %9 = tpu.matmul %7, %8, %cst_8 {dimension_numbers = #tpu.dot_dimension_numbers<[1], [0], [0], [1], [0, 0, 1, 1], [], []>} : vector<8x128xf32>, vector<128x128xf32>, vector<8x128xf32> -> vector<8x128xf32>
    %c0_9 = arith.constant 0 : index
    %c0_10 = arith.constant 0 : index
    %10 = vector.load %arg5[%c0_9, %c0_10] : memref<1x128xf32, #tpu.memory_space<vmem>>, vector<1x128xf32>
    %11 = vector.broadcast %10 : vector<1x128xf32> to vector<8x128xf32>
    %12 = arith.addf %9, %11 : vector<8x128xf32>
    %cst_11 = arith.constant dense<0xFF800000> : vector<8xf32>
    %13 = vector.multi_reduction <maximumf>, %12, %cst_11 [1] : vector<8x128xf32> to vector<8xf32>
    %14 = vector.shape_cast %13 : vector<8xf32> to vector<8x1xf32>
    %15 = vector.broadcast %14 : vector<8x1xf32> to vector<8x128xf32>
    %16 = arith.subf %12, %15 : vector<8x128xf32>
    %17 = math.exp %16 : vector<8x128xf32>
    %cst_12 = arith.constant dense<0.000000e+00> : vector<8xf32>
    %18 = vector.multi_reduction <add>, %17, %cst_12 [1] : vector<8x128xf32> to vector<8xf32>
    %19 = vector.shape_cast %18 : vector<8xf32> to vector<8x1xf32>
    %20 = math.log %19 : vector<8x1xf32>
    %21 = vector.broadcast %20 : vector<8x1xf32> to vector<8x128xf32>
    %22 = arith.subf %16, %21 : vector<8x128xf32>
    %c0_13 = arith.constant 0 : index
    %c0_14 = arith.constant 0 : index
    %23 = vector.load %arg6[%c0_13, %c0_14] : memref<8x128xf32, #tpu.memory_space<vmem>>, vector<8x128xf32>
    tpu.vector_store %arg6[%c0_13, %c0_14], %22 {strides = array<i32>} : memref<8x128xf32, #tpu.memory_space<vmem>>, vector<8x128xf32>,
    return
  }
  func.func @transform_0(%arg0: i32) -> (i32, i32) {
    %c0_i32 = arith.constant 0 : i32
    %c0_i32_0 = arith.constant 0 : i32
    return %arg0, %c0_i32 : i32, i32
  }
  func.func @transform_1(%arg0: i32) -> (i32, i32) {
    %c0_i32 = arith.constant 0 : i32
    %c0_i32_0 = arith.constant 0 : i32
    %c0_i32_1 = arith.constant 0 : i32
    return %c0_i32, %c0_i32_0 : i32, i32
  }
  func.func @transform_2(%arg0: i32) -> (i32, i32) {
    %c0_i32 = arith.constant 0 : i32
    %c0_i32_0 = arith.constant 0 : i32
    %c0_i32_1 = arith.constant 0 : i32
    return %c0_i32, %c0_i32_0 : i32, i32
  }
  func.func @transform_3(%arg0: i32) -> (i32, i32) {
    %c0_i32 = arith.constant 0 : i32
    %c0_i32_0 = arith.constant 0 : i32
    %c0_i32_1 = arith.constant 0 : i32
    return %c0_i32, %c0_i32_0 : i32, i32
  }
  func.func @transform_4(%arg0: i32) -> (i32, i32) {
    %c0_i32 = arith.constant 0 : i32
    %c0_i32_0 = arith.constant 0 : i32
    %c0_i32_1 = arith.constant 0 : i32
    return %c0_i32, %c0_i32_0 : i32, i32
  }
  func.func @transform_5(%arg0: i32) -> (i32, i32) {
    %c0_i32 = arith.constant 0 : i32
    %c0_i32_0 = arith.constant 0 : i32
    return %arg0, %c0_i32 : i32, i32
  }
}

</mosaic_0001>

<bundles_post_ra>
// kernel: tpu_custom_call.1
= control target key start
LH: loop header
LB: loop body
LE: loop exit
PB: predicated region body
PF: predicated region fallthrough
CT: control target
= control target key end

     0   :  { %10 = vsyncpa [#allocation3], 0  ;;  %s1085_s0 = inlined_call_operand.hbm [shape: f32[8,784], index: 0, kind: input, shape index: {}]   ;;  %s1086_s1 = inlined_call_operand.hbm [shape: f32[784,128], index: 1, kind: input, shape index: {}]   ;;  %s1087_s2 = inlined_call_operand.vmem [shape: f32[1,128], index: 2, kind: input, shape index: {}]   ;;  %s1088_s3 = inlined_call_operand.hbm [shape: f32[128,128], index: 3, kind: input, shape index: {}]   ;;  %s1089_s4 = inlined_call_operand.vmem [shape: f32[1,128], index: 4, kind: input, shape index: {}]   ;;  %s1090_s5 = inlined_call_operand.hbm [shape: f32[8,128], index: 5, kind: output, shape index: {}]  }
   0x1   :  { %11 = vsyncpa [#allocation6], 0 }
   0x2   :  { %12 = vsyncpa [#allocation4], 0  ;;  %s977_s18 = smov [#allocation5]   ;;  %s883_s22 = scalar_lea.hbm %s1086_s1, 12544 }
   0x3   :  { %s28_s19 = sshll.u32 %s977_s18, 4  ;;  %p884_p0 = scmp.ne.s32.totalorder %s1086_s1, %s883_s22  ;;  %s29_s19 = int_to_ptr.vmem [resolvable:$true] %s28_s19 }
   0x4   :  { %p887_p1 = scmp.lt.u32.totalorder %s883_s22, %s1086_s1 }
   0x6   :  { %p889_p2 = pnand %p887_p1, %p884_p0 }
   0x8   :  { %892 = shalt.err (!%p889_p2)
}
   0x9   :  { %s893_s27 = scalar_lea.vmem %s29_s19, 12544  ;;  %p898_p4 = scmp.lt.s32.totalorder %s29_s19, %s29_s19 }
   0xa   :  { %p894_p3 = scmp.ne.s32.totalorder %s29_s19, %s893_s27  ;;  %p899_p5 = scmp.lt.s32.totalorder %s893_s27, %s893_s27 }
   0xc   :  { %p900_p6 = por %p899_p5, %p898_p4 }
   0xe   :  { %p901_p7 = pnand %p900_p6, %p894_p3 }
  0x10   :  { %904 = shalt.err (!%p901_p7)
}
  0x11   :  { %s978_s28 = smov 128   ;;  %s979_s29 = smov 8  }
  0x12   :  { %34 = dma.hbm_to_vmem [thread:$0]  %s1086_s1, 12544, %s29_s19, [#allocation6], %s978_s28, %s978_s28, %s979_s29  }
  0x13   :  { %s980_s7 = smov [#allocation2]   ;;  %s981_s9 = smov [#allocation7]  }
  0x14   :  { %s19_s8 = sshll.u32 %s980_s7, 4  ;;  %s42_s10 = sshll.u32 %s981_s9, 4  ;;  %s20_s8 = int_to_ptr.vmem [resolvable:$true] %s19_s8  ;;  %s43_s10 = int_to_ptr.vmem [resolvable:$true] %s42_s10 }
  0x15   :  { %s905_s13 = scalar_lea.hbm %s1085_s0, 896 }
  0x16   :  { %p906_p8 = scmp.ne.s32.totalorder %s1085_s0, %s905_s13  ;;  %p909_p9 = scmp.lt.u32.totalorder %s905_s13, %s1085_s0 }
  0x18   :  { %p911_p10 = pnand %p909_p9, %p906_p8 }
  0x1a   :  { %914 = shalt.err (!%p911_p10)
}
  0x1b   :  { %s915_s1 = scalar_lea.vmem %s20_s8, 896  ;;  %p920_p12 = scmp.lt.s32.totalorder %s20_s8, %s20_s8 }
  0x1c   :  { %p916_p11 = scmp.ne.s32.totalorder %s20_s8, %s915_s1  ;;  %p921_p13 = scmp.lt.s32.totalorder %s915_s1, %s915_s1 }
  0x1e   :  { %p922_p0 = por %p921_p13, %p920_p12 }
  0x20   :  { %p923_p1 = pnand %p922_p0, %p916_p11 }
  0x22   :  { %926 = shalt.err (!%p923_p1)
}
  0x23   :  { %22 = dma.hbm_to_vmem [thread:$0]  %s1085_s0, 896, %s20_s8, [#allocation3]  }
  0x24   :  { %s927_s22 = scalar_lea.hbm %s1088_s3, 2048 }
  0x25   :  { %p928_p2 = scmp.ne.s32.totalorder %s1088_s3, %s927_s22  ;;  %p931_p3 = scmp.lt.u32.totalorder %s927_s22, %s1088_s3 }
  0x27   :  { %p933_p4 = pnand %p931_p3, %p928_p2 }
  0x29   :  { %936 = shalt.err (!%p933_p4)
}
  0x2a   :  { %s937_s27 = scalar_lea.vmem %s43_s10, 2048  ;;  %p942_p6 = scmp.lt.s32.totalorder %s43_s10, %s43_s10 }
  0x2b   :  { %p938_p5 = scmp.ne.s32.totalorder %s43_s10, %s937_s27  ;;  %p943_p7 = scmp.lt.s32.totalorder %s937_s27, %s937_s27 }
  0x2d   :  { %p944_p8 = por %p943_p7, %p942_p6 }
  0x2f   :  { %p945_p9 = pnand %p944_p8, %p938_p5 }
  0x31   :  { %948 = shalt.err (!%p945_p9)
}
  0x32   :  { %48 = dma.hbm_to_vmem [thread:$0]  %s1088_s3, 2048, %s43_s10, [#allocation6], %s978_s28, %s978_s28, %s979_s29  }
  0x33   :  { %971 = dma.done.wait [#allocation3], 896  }
  0x34   :  { %972 = vsyncadd [#allocation3], 4294966400 }
  0x35   :  { %973 = dma.done.wait [#allocation6], 14592  }
  0x36   :  { %974 = vsyncadd [#allocation6], 4294952704  ;;  %v83_v0 = vld [vmem:[#allocation5 + $0x80] sm:$0xff]  ;;  %v84_v1 = vld [vmem:[#allocation5 + $0x88] sm:$0xff]  ;;  %vm983_vm0 = vmmov 0   ;;  %vm172_vm1 = vcmask 130048  }
  0x37   :  { %v67_v2 = vld [vmem:[#allocation5] sm:$0xff]  ;;  %v747_v3 = vpack.c.bf16 %v84_v1, %v83_v0  ;;  %v68_v4 = vld [vmem:[#allocation5 + $0x8] sm:$0xff]  ;;  %v85_v11 = vld [vmem:[#allocation5 + $0x90] sm:$0xff] }
  0x38   :  { %v115_v5 = vld [vmem:[#allocation5 + $0x180] sm:$0xff]  ;;  %v116_v6 = vld [vmem:[#allocation5 + $0x188] sm:$0xff]  ;;  %v749_v7 = vpack.c.bf16 %v68_v4, %v67_v2  ;;  %v86_v13 = vld [vmem:[#allocation5 + $0x98] sm:$0xff] }
  0x39   :  { %v779_v8 = vpack.c.bf16 %v116_v6, %v115_v5  ;;  %v99_v9 = vld [vmem:[#allocation5 + $0x100] sm:$0xff]  ;;  %v100_v10 = vld [vmem:[#allocation5 + $0x108] sm:$0xff]  ;;  %748 = vmatprep.subr.bf16.mxu0 %v747_v3  ;;  %v69_v14 = vld [vmem:[#allocation5 + $0x10] sm:$0xff]  ;;  %v751_v16 = vpack.c.bf16 %v86_v13, %v85_v11 }
  0x3a   :  { %v781_v12 = vpack.c.bf16 %v100_v10, %v99_v9  ;;  %v70_v15 = vld [vmem:[#allocation5 + $0x18] sm:$0xff]  ;;  %750 = vmatpush3.bf16.msra.mxu0 %v749_v7  ;;  %v117_v18 = vld [vmem:[#allocation5 + $0x190] sm:$0xff]  ;;  %v87_v23 = vld [vmem:[#allocation5 + $0xa0] sm:$0xff] }
  0x3b   :  { %780 = vmatprep.subr.bf16.mxu1 %v779_v8  ;;  %v753_v17 = vpack.c.bf16 %v70_v15, %v69_v14  ;;  %v118_v19 = vld [vmem:[#allocation5 + $0x198] sm:$0xff]  ;;  %v101_v20 = vld [vmem:[#allocation5 + $0x110] sm:$0xff]  ;;  %v88_v24 = vld [vmem:[#allocation5 + $0xa8] sm:$0xff]  ;;  %752 = vmatprep.subr.bf16.mxu0 %v751_v16 }
  0x3c   :  { %782 = vmatpush3.bf16.msra.mxu1 %v781_v12  ;;  %v783_v21 = vpack.c.bf16 %v118_v19, %v117_v18  ;;  %v102_v22 = vld [vmem:[#allocation5 + $0x118] sm:$0xff]  ;;  %v755_v26 = vpack.c.bf16 %v88_v24, %v87_v23  ;;  %v71_v27 = vld [vmem:[#allocation5 + $0x20] sm:$0xff]  ;;  %v72_v28 = vld [vmem:[#allocation5 + $0x28] sm:$0xff] }
  0x3d   :  { %v785_v25 = vpack.c.bf16 %v102_v22, %v101_v20  ;;  %v119_v29 = vld [vmem:[#allocation5 + $0x1a0] sm:$0xff]  ;;  %v120_v30 = vld [vmem:[#allocation5 + $0x1a8] sm:$0xff]  ;;  %v757_v33 = vpack.c.bf16 %v72_v28, %v71_v27  ;;  %v89_v35 = vld [vmem:[#allocation5 + $0xb0] sm:$0xff] }
  0x3e   :  { %784 = vmatprep.subr.bf16.mxu1 %v783_v21  ;;  %v103_v31 = vld [vmem:[#allocation5 + $0x120] sm:$0xff]  ;;  %v104_v32 = vld [vmem:[#allocation5 + $0x128] sm:$0xff]  ;;  %754 = vmatpush3.bf16.msra.mxu0 %v753_v17  ;;  %v787_v34 = vpack.c.bf16 %v120_v30, %v119_v29  ;;  %v90_v36 = vld [vmem:[#allocation5 + $0xb8] sm:$0xff] }
  0x3f   :  { %v73_v37 = vld [vmem:[#allocation5 + $0x30] sm:$0xff]  ;;  %756 = vmatprep.subr.bf16.mxu0 %v755_v26  ;;  %v789_v38 = vpack.c.bf16 %v104_v32, %v103_v31  ;;  %v759_v39 = vpack.c.bf16 %v90_v36, %v89_v35  ;;  %v74_v40 = vld [vmem:[#allocation5 + $0x38] sm:$0xff]  ;;  %v91_v46 = vld [vmem:[#allocation5 + $0xc0] sm:$0xff] }
  0x40   :  { %786 = vmatpush3.bf16.msra.mxu1 %v785_v25  ;;  %v121_v41 = vld [vmem:[#allocation5 + $0x1b0] sm:$0xff]  ;;  %v122_v42 = vld [vmem:[#allocation5 + $0x1b8] sm:$0xff]  ;;  %v92_v47 = vld [vmem:[#allocation5 + $0xc8] sm:$0xff]  ;;  %v761_v48 = vpack.c.bf16 %v74_v40, %v73_v37 }
  0x41   :  { %788 = vmatprep.subr.bf16.mxu1 %v787_v34  ;;  %v791_v43 = vpack.c.bf16 %v122_v42, %v121_v41  ;;  %v105_v44 = vld [vmem:[#allocation5 + $0x130] sm:$0xff]  ;;  %v106_v45 = vld [vmem:[#allocation5 + $0x138] sm:$0xff]  ;;  %v123_v49 = vld [vmem:[#allocation5 + $0x1c0] sm:$0xff]  ;;  %v763_v52 = vpack.c.bf16 %v92_v47, %v91_v46 }
  0x42   :  { %758 = vmatpush3.bf16.msra.mxu0 %v757_v33  ;;  %v124_v50 = vld [vmem:[#allocation5 + $0x1c8] sm:$0xff]  ;;  %v793_v51 = vpack.c.bf16 %v106_v45, %v105_v44  ;;  %v75_v53 = vld [vmem:[#allocation5 + $0x40] sm:$0xff]  ;;  %v93_v58 = vld [vmem:[#allocation5 + $0xd0] sm:$0xff] }
  0x43   :  { %760 = vmatprep.subr.bf16.mxu0 %v759_v39  ;;  %v76_v54 = vld [vmem:[#allocation5 + $0x48] sm:$0xff]  ;;  %v107_v55 = vld [vmem:[#allocation5 + $0x140] sm:$0xff]  ;;  %v795_v56 = vpack.c.bf16 %v124_v50, %v123_v49  ;;  %v94_v59 = vld [vmem:[#allocation5 + $0xd8] sm:$0xff]  ;;  %v982_v50 = vmov 0.0|0.0  }
  0x44   :  { %790 = vmatpush3.bf16.msra.mxu1 %v789_v38  ;;  %v108_v57 = vld [vmem:[#allocation5 + $0x148] sm:$0xff]  ;;  %v125_v60 = vld [vmem:[#allocation5 + $0x1d0] sm:$0xff]  ;;  %v126_v61 = vld [vmem:[#allocation5 + $0x1d8] sm:$0xff]  ;;  %v765_v62 = vpack.c.bf16 %v76_v54, %v75_v53  ;;  %v767_v0 = vpack.c.bf16 %v94_v59, %v93_v58 }
  0x45   :  { %792 = vmatprep.subr.bf16.mxu1 %v791_v43  ;;  %v797_v63 = vpack.c.bf16 %v108_v57, %v107_v55  ;;  %v77_v1 = vld [vmem:[#allocation5 + $0x50] sm:$0xff]  ;;  %v78_v2 = vld [vmem:[#allocation5 + $0x58] sm:$0xff]  ;;  %v799_v4 = vpack.c.bf16 %v126_v61, %v125_v60  ;;  %v95_v6 = vld [vmem:[#allocation5 + $0xe0] sm:$0xff]  ;;  %v984_v60 = vmov 0.0  }
  0x46   :  { %762 = vmatpush3.bf16.msra.mxu0 %v761_v48  ;;  %v109_v3 = vld [vmem:[#allocation5 + $0x150] sm:$0xff]  ;;  %v110_v5 = vld [vmem:[#allocation5 + $0x158] sm:$0xff]  ;;  %v96_v7 = vld [vmem:[#allocation5 + $0xe8] sm:$0xff]  ;;  %v769_v10 = vpack.c.bf16 %v78_v2, %v77_v1 }
  0x47   :  { %764 = vmatprep.subr.bf16.mxu0 %v763_v52  ;;  %v127_v8 = vld [vmem:[#allocation5 + $0x1e0] sm:$0xff]  ;;  %v128_v9 = vld [vmem:[#allocation5 + $0x1e8] sm:$0xff]  ;;  %v61_v12 = vld [vmem:[#allocation2 + $0x8] sm:$0xff]  ;;  %v801_v13 = vpack.c.bf16 %v110_v5, %v109_v3  ;;  %v771_v14 = vpack.c.bf16 %v96_v7, %v95_v6 }
  0x48   :  { %794 = vmatpush3.bf16.msra.mxu1 %v793_v51  ;;  %v79_v11 = vld [vmem:[#allocation5 + $0x60] sm:$0xff]  ;;  %v80_v15 = vld [vmem:[#allocation5 + $0x68] sm:$0xff]  ;;  %v803_v18 = vpack.c.bf16 %v128_v9, %v127_v8  ;;  %v97_v19 = vld [vmem:[#allocation5 + $0xf0] sm:$0xff]  ;;  %240 = vmatprep.mubr.f32.mxu0 %v61_v12 }
  0x49   :  { %796 = vmatprep.subr.bf16.mxu1 %v795_v56  ;;  %v111_v16 = vld [vmem:[#allocation5 + $0x160] sm:$0xff]  ;;  %v112_v17 = vld [vmem:[#allocation5 + $0x168] sm:$0xff]  ;;  %v98_v20 = vld [vmem:[#allocation5 + $0xf8] sm:$0xff]  ;;  %v773_v24 = vpack.c.bf16 %v80_v15, %v79_v11 }
  0x4a   :  { %766 = vmatpush3.bf16.msra.mxu0 %v765_v62  ;;  %v63_v21 = vld [vmem:[#allocation2 + $0x18] sm:$0xff]  ;;  %v129_v22 = vld [vmem:[#allocation5 + $0x1f0] sm:$0xff]  ;;  %v130_v23 = vld [vmem:[#allocation5 + $0x1f8] sm:$0xff]  ;;  %v805_v25 = vpack.c.bf16 %v112_v17, %v111_v16  ;;  %v775_v26 = vpack.c.bf16 %v98_v20, %v97_v19 }
  0x4b   :  { %768 = vmatprep.subr.bf16.mxu0 %v767_v0  ;;  %310 = vmatprep.mubr.f32.mxu1 %v63_v21  ;;  %v81_v27 = vld [vmem:[#allocation5 + $0x70] sm:$0xff]  ;;  %v82_v28 = vld [vmem:[#allocation5 + $0x78] sm:$0xff]  ;;  %v807_v30 = vpack.c.bf16 %v130_v23, %v129_v22  ;;  %v147_v32 = vld [vmem:[#allocation5 + $0x280] sm:$0xff] }
  0x4c   :  { %798 = vmatpush3.bf16.msra.mxu1 %v797_v63  ;;  %v113_v29 = vld [vmem:[#allocation5 + $0x170] sm:$0xff]  ;;  %v114_v31 = vld [vmem:[#allocation5 + $0x178] sm:$0xff]  ;;  %v148_v33 = vld [vmem:[#allocation5 + $0x288] sm:$0xff]  ;;  %v777_v34 = vpack.c.bf16 %v82_v28, %v81_v27 }
  0x4d   :  { %800 = vmatprep.subr.bf16.mxu1 %v799_v4  ;;  %v809_v35 = vpack.c.bf16 %v114_v31, %v113_v29  ;;  %v811_v36 = vpack.c.bf16 %v148_v33, %v147_v32  ;;  %v131_v37 = vld [vmem:[#allocation5 + $0x200] sm:$0xff]  ;;  %v132_v38 = vld [vmem:[#allocation5 + $0x208] sm:$0xff]  ;;  %v149_v39 = vld [vmem:[#allocation5 + $0x290] sm:$0xff] }
  0x4e   :  { %770 = vmatpush3.bf16.msra.mxu0 %v769_v10  ;;  %v150_v40 = vld [vmem:[#allocation5 + $0x298] sm:$0xff]  ;;  %v60_v41 = vld [vmem:[#allocation2] sm:$0xff]  ;;  %v813_v42 = vpack.c.bf16 %v132_v38, %v131_v37  ;;  %v133_v44 = vld [vmem:[#allocation5 + $0x210] sm:$0xff] }
  0x4f   :  { %772 = vmatprep.subr.bf16.mxu0 %v771_v14  ;;  %v62_v43 = vld [vmem:[#allocation2 + $0x10] sm:$0xff]  ;;  %v815_v45 = vpack.c.bf16 %v150_v40, %v149_v39  ;;  %v151_v47 = vld [vmem:[#allocation5 + $0x2a0] sm:$0xff]  ;;  %v152_v48 = vld [vmem:[#allocation5 + $0x2a8] sm:$0xff] }
  0x50   :  { %802 = vmatpush3.bf16.msra.mxu1 %v801_v13  ;;  %v134_v46 = vld [vmem:[#allocation5 + $0x218] sm:$0xff]  ;;  %v65_v49 = vld [vmem:[#allocation2 + $0x28] sm:$0xff]  ;;  %v163_v51 = vld [vmem:[#allocation5 + $0x300] sm:$0xff]  ;;  %v819_v55 = vpack.c.bf16 %v152_v48, %v151_v47 }
  0x51   :  { %804 = vmatprep.subr.bf16.mxu1 %v803_v18  ;;  %v164_v52 = vld [vmem:[#allocation5 + $0x308] sm:$0xff]  ;;  %v817_v54 = vpack.c.bf16 %v134_v46, %v133_v44  ;;  %v135_v56 = vld [vmem:[#allocation5 + $0x220] sm:$0xff]  ;;  %v153_v58 = vld [vmem:[#allocation5 + $0x2b0] sm:$0xff] }
  0x52   :  { %774 = vmatpush3.bf16.msra.mxu0 %v773_v24  ;;  %v844_v53 = vpack.c.bf16 %v164_v52, %v163_v51  ;;  %v136_v57 = vld [vmem:[#allocation5 + $0x228] sm:$0xff]  ;;  %v154_v59 = vld [vmem:[#allocation5 + $0x2b8] sm:$0xff]  ;;  %v137_v0 = vld [vmem:[#allocation5 + $0x230] sm:$0xff] }
  0x53   :  { %776 = vmatprep.subr.bf16.mxu0 %v775_v26  ;;  %v66_v61 = vld [vmem:[#allocation2 + $0x30] sm:$0xff]  ;;  %v821_v62 = vpack.c.bf16 %v136_v57, %v135_v56  ;;  %v823_v63 = vpack.c.bf16 %v154_v59, %v153_v58  ;;  %v155_v2 = vld [vmem:[#allocation5 + $0x2c0] sm:$0xff]  ;;  %v156_v3 = vld [vmem:[#allocation5 + $0x2c8] sm:$0xff] }
  0x54   :  { %806 = vmatpush3.bf16.msra.mxu1 %v805_v25  ;;  %v138_v1 = vld [vmem:[#allocation5 + $0x238] sm:$0xff]  ;;  %v827_v5 = vpack.c.bf16 %v156_v3, %v155_v2  ;;  %v139_v6 = vld [vmem:[#allocation5 + $0x240] sm:$0xff]  ;;  %v140_v7 = vld [vmem:[#allocation5 + $0x248] sm:$0xff] }
  0x55   :  { %808 = vmatprep.subr.bf16.mxu1 %v807_v30  ;;  %v825_v4 = vpack.c.bf16 %v138_v1, %v137_v0  ;;  %v157_v8 = vld [vmem:[#allocation5 + $0x2d0] sm:$0xff]  ;;  %v158_v9 = vld [vmem:[#allocation5 + $0x2d8] sm:$0xff]  ;;  %v829_v10 = vpack.c.bf16 %v140_v7, %v139_v6  ;;  %v159_v14 = vld [vmem:[#allocation5 + $0x2e0] sm:$0xff] }
  0x56   :  { %778 = vmatpush3.bf16.msra.mxu0 %v777_v34  ;;  %v831_v11 = vpack.c.bf16 %v158_v9, %v157_v8  ;;  %v141_v12 = vld [vmem:[#allocation5 + $0x250] sm:$0xff]  ;;  %v142_v13 = vld [vmem:[#allocation5 + $0x258] sm:$0xff]  ;;  %v160_v15 = vld [vmem:[#allocation5 + $0x2e8] sm:$0xff] }
  0x57   :  { %812 = vmatprep.subr.bf16.mxu0 %v811_v36  ;;  %v833_v16 = vpack.c.bf16 %v142_v13, %v141_v12  ;;  %v835_v17 = vpack.c.bf16 %v160_v15, %v159_v14  ;;  %v143_v18 = vld [vmem:[#allocation5 + $0x260] sm:$0xff]  ;;  %v144_v19 = vld [vmem:[#allocation5 + $0x268] sm:$0xff]  ;;  %v161_v20 = vld [vmem:[#allocation5 + $0x2f0] sm:$0xff] }
  0x58   :  { %810 = vmatpush3.bf16.msra.mxu1 %v809_v35  ;;  %v162_v21 = vld [vmem:[#allocation5 + $0x2f8] sm:$0xff]  ;;  %v837_v22 = vpack.c.bf16 %v144_v19, %v143_v18  ;;  %v145_v24 = vld [vmem:[#allocation5 + $0x270] sm:$0xff]  ;;  %v64_v27 = vld [vmem:[#allocation2 + $0x20] sm:$0xff] }
  0x59   :  { %843 = vmatprep.subr.bf16.mxu1 %v982_v50  ;;  %241 = vmatmul.mubr.f32.vlgmr.msra.gmra.mrb[0].mxu0 %v60_v41  ;;  %v839_v23 = vpack.c.bf16 %v162_v21, %v161_v20  ;;  %v146_v25 = vld [vmem:[#allocation5 + $0x278] sm:$0xff]  ;;  %v457_v28 = vld [vmem:[#allocation7] sm:$0xff]  ;;  %v459_v30 = vld [vmem:[#allocation7 + $0x10] sm:$0xff] }
  0x5a   :  { %814 = vmatpush3.bf16.msra.mxu0 %v813_v42  ;;  %380 = vmatprep.mubr.f32.mxu0 %v65_v49  ;;  %v841_v26 = vpack.c.bf16 %v146_v25, %v145_v24  ;;  %v458_v29 = vld [vmem:[#allocation7 + $0x8] sm:$0xff]  ;;  %v460_v32 = vld [vmem:[#allocation7 + $0x18] sm:$0xff]  ;;  %v461_v34 = vld [vmem:[#allocation7 + $0x20] sm:$0xff] }
  0x5b   :  { %311 = vmatmul.mubr.f32.vlgmr.msra.gmra.mrb[0].mxu1 %v62_v43  ;;  %816 = vmatprep.subr.bf16.mxu0 %v815_v45  ;;  %v847_v31 = vpack.c.bf16 %v458_v29, %v457_v28  ;;  %v850_v33 = vpack.c.bf16 %v460_v32, %v459_v30  ;;  %v462_v35 = vld [vmem:[#allocation7 + $0x28] sm:$0xff]  ;;  %v463_v37 = vld [vmem:[#allocation7 + $0x30] sm:$0xff]  ;;  %v464_v38 = vld [vmem:[#allocation7 + $0x38] sm:$0xff] }
  0x5c   :  { %845 = vmatpush3.bf16.msra.mxu1 %v844_v53  ;;  %709 = vmatprep.mubr.msk.f32.mxu1 %vm983_vm0, %v984_v60  ;;  %v853_v36 = vpack.c.bf16 %v462_v35, %v461_v34  ;;  %v856_v39 = vpack.c.bf16 %v464_v38, %v463_v37  ;;  %v465_v40 = vld [vmem:[#allocation7 + $0x40] sm:$0xff]  ;;  %v466_v41 = vld [vmem:[#allocation7 + $0x48] sm:$0xff]  ;;  %v467_v43 = vld [vmem:[#allocation7 + $0x50] sm:$0xff] }
  0x5d   :  { %846 = vmatprep.subr.bf16.mxu1 %v982_v50  ;;  %v859_v42 = vpack.c.bf16 %v466_v41, %v465_v40  ;;  %v468_v44 = vld [vmem:[#allocation7 + $0x58] sm:$0xff]  ;;  %v469_v46 = vld [vmem:[#allocation7 + $0x60] sm:$0xff]  ;;  %v470_v47 = vld [vmem:[#allocation7 + $0x68] sm:$0xff] }
  0x5e   :  { %818 = vmatpush3.bf16.msra.mxu0 %v817_v54  ;;  %v862_v45 = vpack.c.bf16 %v468_v44, %v467_v43  ;;  %v865_v48 = vpack.c.bf16 %v470_v47, %v469_v46  ;;  %v471_v49 = vld [vmem:[#allocation7 + $0x70] sm:$0xff]  ;;  %v472_v51 = vld [vmem:[#allocation7 + $0x78] sm:$0xff] }
  0x5f   :  { %820 = vmatprep.subr.bf16.mxu0 %v819_v55  ;;  %710 = vmatmul.mubr.msk.f32.vlgmr.msra.gmra.mrb[2].mxu1 %vm172_vm1, %v66_v61  ;;  %v868_v52 = vpack.c.bf16 %v472_v51, %v471_v49  ;;  %v577_v54 = vld [vmem:[%s1087_s2] ss:$0 sm:$0xff]  ;;  %s985_s2 = smov [#allocation8]  }
  0x60   :  { %744 = vmatprep.mubr.msk.f32.mxu1 %vm983_vm0, %v984_v60  ;;  %848 = vmatpush3.bf16.msra.mxu1 %v847_v31  ;;  %s567_s7 = sshll.u32 %s985_s2, 4  ;;  %s568_s7 = int_to_ptr.vmem [resolvable:$true] %s567_s7 }
  0x61   :  { %849 = vmatprep.subr.bf16.mxu1 %v982_v50  ;;  %p954_p11 = scmp.lt.s32.totalorder %s568_s7, %s568_s7 }
  0x62   :  { %822 = vmatpush3.bf16.msra.mxu0 %v821_v62 }
  0x63   :  { %824 = vmatprep.subr.bf16.mxu0 %v823_v63 }
  0x64   :  { %851 = vmatpush3.bf16.msra.mxu1 %v850_v33 }
  0x65   :  { %852 = vmatprep.subr.bf16.mxu1 %v982_v50 }
  0x66   :  { %826 = vmatpush3.bf16.msra.mxu0 %v825_v4 }
  0x67   :  { %828 = vmatprep.subr.bf16.mxu0 %v827_v5  ;;  %v579_v5 = vld [vmem:[%s1089_s4] ss:$0 sm:$0xff]  ;;  %s949_s4 = scalar_lea.vmem %s568_s7, 128 }
  0x68   :  { %854 = vmatpush3.bf16.msra.mxu1 %v853_v36  ;;  %p950_p10 = scmp.ne.s32.totalorder %s568_s7, %s949_s4  ;;  %p955_p12 = scmp.lt.s32.totalorder %s949_s4, %s949_s4 }
  0x69   :  { %855 = vmatprep.subr.bf16.mxu1 %v982_v50 }
  0x6a   :  { %830 = vmatpush3.bf16.msra.mxu0 %v829_v10  ;;  %p956_p13 = por %p955_p12, %p954_p11 }
  0x6b   :  { %832 = vmatprep.subr.bf16.mxu0 %v831_v11 }
  0x6c   :  { %857 = vmatpush3.bf16.msra.mxu1 %v856_v39  ;;  %p957_p0 = pnand %p956_p13, %p950_p10 }
  0x6d   :  { %858 = vmatprep.subr.bf16.mxu1 %v982_v50 }
  0x6e   :  { %834 = vmatpush3.bf16.msra.mxu0 %v833_v16 }
  0x6f   :  { %836 = vmatprep.subr.bf16.mxu0 %v835_v17 }
  0x70   :  { %860 = vmatpush3.bf16.msra.mxu1 %v859_v42 }
  0x71   :  { %861 = vmatprep.subr.bf16.mxu1 %v982_v50 }
  0x72   :  { %838 = vmatpush3.bf16.msra.mxu0 %v837_v22 }
  0x73   :  { %840 = vmatprep.subr.bf16.mxu0 %v839_v23 }
  0x74   :  { %863 = vmatpush3.bf16.msra.mxu1 %v862_v45 }
  0x75   :  { %864 = vmatprep.subr.bf16.mxu1 %v982_v50 }
  0x76   :  { %842 = vmatpush3.bf16.msra.mxu0 %v841_v26 }
  0x78   :  { %866 = vmatpush3.bf16.msra.mxu1 %v865_v48 }
  0x79   :  { %381 = vmatmul.mubr.f32.vlgmr.msra.gmra.mrb[2].mxu0 %v64_v27  ;;  %867 = vmatprep.subr.bf16.mxu1 %v982_v50 }
  0x7c   :  { %869 = vmatpush3.bf16.msra.mxu1 %v868_v52 }
 0x12c   :  { %v612_v53 = vpop.f32.mrb[0].mxu0 }
 0x12d   :  { %v613_v55 = vpop.f32.mrb[1].mxu0 }
 0x12e   :  { %v647_v56 = vpop.f32.mrb[0].mxu1  ;;  %v614_v57 = vadd.f32 %v613_v55, %v612_v53 }
 0x12f   :  { %v648_v58 = vpop.f32.mrb[1].mxu1 }
 0x130   :  { %v649_v59 = vadd.f32 %v648_v58, %v647_v56  ;;  %v243_v60 = vadd.f32 %v614_v57, %v577_v54 }
 0x132   :  { %v313_v61 = vadd.f32 %v649_v59, %v243_v60  ;;  %v452_v62 = vpop.f32.mrb[2].mxu1 }
 0x133   :  { %v711_v63 = vpop.f32.mrb[3].mxu1 }
 0x14c   :  { %v682_v0 = vpop.f32.mrb[2].mxu0 }
 0x14d   :  { %v683_v50 = vpop.f32.mrb[3].mxu0 }
 0x14e   :  { %v684_v1 = vadd.f32 %v683_v50, %v682_v0 }
 0x150   :  { %v383_v2 = vadd.f32 %v684_v1, %v313_v61 }
 0x152   :  { %v453_v3 = vadd.f32 %v452_v62, %v383_v2 }
 0x154   :  { %v456_v4 = vmax.f32 %v453_v3, 0.0 }
 0x156   :  { %745 = vmatmul.mubr.f32.vlgmr.msra.gmra.mrb[4].mxu1 %v456_v4 }
 0x229   :  { %v546_v6 = vpop.f32.mrb[4].mxu1 }
 0x22a   :  { %v547_v7 = vadd.f32 %v579_v5, %v546_v6  ;;  %v746_v8 = vpop.f32.mrb[5].mxu1 }
 0x22c   :  { %550 = vmax.xlane.f32.xlu0 %v547_v7 }
 0x2b9   :  { %v551_v9 = vpop.xlane.xlu0 %550 }
 0x2ba   :  { %v552_v10 = vsub.f32 %v547_v7, %v551_v9 }
 0x2bc   :  { %v553_v11 = vmul.f32 1.442695, %v552_v10 }
 0x2be   :  { %879 = vpow2.f32 %v553_v11 }
 0x2c8   :  { %v880_v12 = vpop.eup %879 }
 0x2c9   :  { %555 = vadd.xlane.f32.xlu0 %v880_v12 }
 0x356   :  { %v556_v13 = vpop.xlane.xlu0 %555 }
 0x357   :  { %881 = vlog2.f32 %v556_v13 }
 0x361   :  { %v882_v14 = vpop.eup %881 }
 0x362   :  { %v558_v15 = vmul.f32 0.6931472, %v882_v14 }
 0x364   :  { %v559_v16 = vsub.f32 %v552_v10, %v558_v15 }
 0x366   :  { %560 = vst [vmem:[#allocation8] sm:$0xff] %v559_v16 }
 0x367   :  { %960 = shalt.err (!%p957_p0)
}
 0x368   :  { %s961_s10 = scalar_lea.hbm %s1090_s5, 128 }
 0x369   :  { %p962_p1 = scmp.ne.s32.totalorder %s1090_s5, %s961_s10  ;;  %p965_p2 = scmp.lt.u32.totalorder %s961_s10, %s1090_s5 }
 0x36b   :  { %p967_p3 = pnand %p965_p2, %p962_p1 }
 0x36d   :  { %970 = shalt.err (!%p967_p3)
}
 0x36e   :  { %570 = dma.vmem_to_hbm [thread:$0]  %s568_s7, 128, %s1090_s5, [#allocation4]  }
 0x36f   :  { %975 = dma.done.wait [#allocation4], 128  }
 0x370   :  { %976 = vsyncadd [#allocation4], 4294967168 }
 0x371   :  { %574 = vsyncpa [#allocation3], 1 }
 0x372   :  { %575 = vsyncpa [#allocation6], 1 }
 0x373   :  { %576 = vsyncpa [#allocation4], 1 }

</bundles_post_ra>
